<compile_context>
chip_gen: v6e
topology: v6e:2x2x1
jax: 0.10.0
libtpu: 0.0.40
codegen_flags: <defaults>
</compile_context>

<pallas_src>
import functools

import jax
import jax.numpy as jnp
import numpy as np
from jax.experimental import pallas as pl
from jax.experimental.pallas import tpu as pltpu

TIME_STEP = 6


def _lstm_kernel(x_ref,
                 wi0_ref, wh0_ref, b0_ref,
                 wi1_ref, wh1_ref, b1_ref,
                 o_ref,
                 h0s_ref):
    """Runs the full 2-layer LSTM over TIME_STEP steps inside one kernel call.

    x_ref:   (T*B, C)  time-major input sequence
    wiX_ref: (C, 4C)   input->gates weight (layer X), pre-transposed
    whX_ref: (C, 4C)   hidden->gates weight (layer X), pre-transposed
    bX_ref:  (1, 4C)   bias_ih + bias_hh (layer X), f32
    o_ref:   (B, C)    h_t of the top layer at the last timestep (f32)
    h0s_ref: (T*B, C)  VMEM scratch holding all layer-0 hidden states
    """
    TB, C = x_ref.shape
    B = o_ref.shape[0]
    T = TB // B

    # Lane mask selecting the `g` gate block (PyTorch order [i, f, g, o]).
    # Built once and reused by all 12 cells.
    lane = jax.lax.broadcasted_iota(jnp.int32, (B, 4 * C), 1)
    g_mask = (lane >= 2 * C) & (lane < 3 * C)

    def cell(pre_gates, h, c, wh):
        # pre_gates: (B, 4C) f32 = x_t @ Wi + (b_ih + b_hh), precomputed.
        gates = pre_gates + jnp.dot(h.astype(wh.dtype), wh,
                                    preferred_element_type=jnp.float32)
        # Full-vreg activations: sigmoid on i/f/o lanes, tanh on g lanes.
        act = jnp.where(g_mask, jnp.tanh(gates), jax.nn.sigmoid(gates))
        i = act[:, 0 * C:1 * C]
        f = act[:, 1 * C:2 * C]
        g = act[:, 2 * C:3 * C]
        o = act[:, 3 * C:4 * C]
        c_new = f * c + i * g
        h_new = o * jnp.tanh(c_new)
        return h_new, c_new

    wh0 = wh0_ref[...]
    wh1 = wh1_ref[...]
    b0 = b0_ref[...].astype(jnp.float32)
    b1 = b1_ref[...].astype(jnp.float32)

    # ---- Layer 0: one batched input projection for all T timesteps. ----
    xp0 = jnp.dot(x_ref[...], wi0_ref[...],
                  preferred_element_type=jnp.float32) + b0          # (T*B, 4C)

    zeros = jnp.zeros((B, C), jnp.float32)
    h0, c0 = zeros, zeros
    for t in range(T):                      # T == 6: static unroll
        h0, c0 = cell(xp0[t * B:(t + 1) * B, :], h0, c0, wh0)
        h0s_ref[t * B:(t + 1) * B, :] = h0  # stage for layer-1 batched matmul

    # ---- Layer 1: one batched input projection over layer-0 outputs. ----
    hs = h0s_ref[...]
    xp1 = jnp.dot(hs.astype(wi1_ref.dtype), wi1_ref[...],
                  preferred_element_type=jnp.float32) + b1          # (T*B, 4C)

    h1, c1 = zeros, zeros
    for t in range(T):
        h1, c1 = cell(xp1[t * B:(t + 1) * B, :], h1, c1, wh1)

    o_ref[...] = h1.astype(o_ref.dtype)


def init_lstm_params(key, in_planes, dtype=jnp.float32):
    """Deterministic stand-in for PyTorch's LSTM init: U(-1/sqrt(H), 1/sqrt(H))."""
    H = in_planes
    bound = 1.0 / np.sqrt(H)
    keys = jax.random.split(key, 8)
    u = lambda k, shape: jax.random.uniform(k, shape, dtype, -bound, bound)
    params = {}
    for layer, koff in ((0, 0), (1, 4)):
        w_ih = u(keys[koff + 0], (4 * H, H))        # PyTorch layout (4H, H)
        w_hh = u(keys[koff + 1], (4 * H, H))
        b_ih = u(keys[koff + 2], (4 * H,))
        b_hh = u(keys[koff + 3], (4 * H,))
        params[f"wi{layer}"] = w_ih.T               # -> (H, 4H)
        params[f"wh{layer}"] = w_hh.T               # -> (H, 4H)
        params[f"b{layer}"] = (b_ih + b_hh).reshape(1, 4 * H)
    return params


@functools.partial(jax.jit, static_argnames=("in_planes", "matmul_dtype"))
def lstm_forward(x, params, *, in_planes, matmul_dtype=jnp.float32):
    """Mirrors lstm.forward: x.view(-1, 6, C) -> 2-layer LSTM -> rout[:, -1, :].

    matmul_dtype: dtype of the MXU operands (weights / x / h). Use bf16 on
    v6e/v7x for native MXU throughput; accumulation and all elementwise work
    stay in f32.
    """
    C = in_planes
    x3 = x.reshape(-1, TIME_STEP, C)                 # (B, T, C), batch_first
    B = x3.shape[0]
    # Time-major 2D layout: each timestep is a contiguous sublane block and
    # the layer-0 input projection becomes one batched matmul in the kernel.
    x_tm = jnp.transpose(x3, (1, 0, 2)).reshape(TIME_STEP * B, C)

    md = jnp.dtype(matmul_dtype)
    x_tm = x_tm.astype(md)
    wi0 = params["wi0"].astype(md)
    wh0 = params["wh0"].astype(md)
    wi1 = params["wi1"].astype(md)
    wh1 = params["wh1"].astype(md)
    b0 = params["b0"].astype(jnp.float32)
    b1 = params["b1"].astype(jnp.float32)

    vmem = pl.BlockSpec(memory_space=pltpu.MemorySpace.VMEM)
    out = pl.pallas_call(
        _lstm_kernel,
        out_shape=jax.ShapeDtypeStruct((B, C), jnp.float32),
        in_specs=[vmem] * 7,
        out_specs=vmem,
        scratch_shapes=[pltpu.VMEM((TIME_STEP * B, C), jnp.float32)],
    )(x_tm, wi0, wh0, b0, wi1, wh1, b1)
    return out


def _reference_lstm(x, params, in_planes):
    """Pure-JAX reference of the same 2-layer LSTM (sanity check)."""
    x = x.reshape(-1, TIME_STEP, in_planes)
    B, T, C = x.shape

    def cell(x_t, h, c, wi, wh, b):
        g = x_t @ wi + h @ wh + b
        i = jax.nn.sigmoid(g[:, 0 * C:1 * C])
        f = jax.nn.sigmoid(g[:, 1 * C:2 * C])
        gg = jnp.tanh(g[:, 2 * C:3 * C])
        o = jax.nn.sigmoid(g[:, 3 * C:4 * C])
        c = f * c + i * gg
        return o * jnp.tanh(c), c

    z = jnp.zeros((B, C), jnp.float32)
    h0, c0, h1, c1 = z, z, z, z
    for t in range(T):
        h0, c0 = cell(x[:, t, :], h0, c0, params["wi0"], params["wh0"], params["b0"])
        h1, c1 = cell(h0, h1, c1, params["wi1"], params["wh1"], params["b1"])
    return h1


if __name__ == "__main__":
    in_planes = 32
    batch = 4

    key = jax.random.PRNGKey(0)
    kx, kp = jax.random.split(key)
    # Input that `view(-1, 6, in_planes)` reshapes into (batch, 6, in_planes).
    x = jax.random.normal(kx, (batch * TIME_STEP, in_planes), dtype=jnp.float32)
    params = init_lstm_params(kp, in_planes)

    ref = _reference_lstm(x, params, in_planes)

    # f32 MXU operands: matches the PyTorch module's numerics.
    out = lstm_forward(x, params, in_planes=in_planes)
    out = jax.block_until_ready(out)
    assert out.shape == (batch, in_planes)
    np.testing.assert_allclose(np.asarray(out), np.asarray(ref), rtol=1e-4, atol=1e-4)

    # bf16 MXU operands (v6e/v7x native), f32 accumulation / elementwise.
    out_bf16 = lstm_forward(x, params, in_planes=in_planes,
                            matmul_dtype=jnp.bfloat16)
    out_bf16 = jax.block_until_ready(out_bf16)
    np.testing.assert_allclose(np.asarray(out_bf16), np.asarray(ref),
                               rtol=1e-1, atol=1e-1)

    print("KERNEL_OK")
</pallas_src>

<mosaic_0001>
module attributes {stable_mosaic.version = 11 : i64} {
  func.func @_lstm_kernel(%arg0: memref<24x32xf32, #tpu.memory_space<vmem>>, %arg1: memref<32x128xf32, #tpu.memory_space<vmem>>, %arg2: memref<32x128xf32, #tpu.memory_space<vmem>>, %arg3: memref<1x128xf32, #tpu.memory_space<vmem>>, %arg4: memref<32x128xf32, #tpu.memory_space<vmem>>, %arg5: memref<32x128xf32, #tpu.memory_space<vmem>>, %arg6: memref<1x128xf32, #tpu.memory_space<vmem>>, %arg7: memref<4x32xf32, #tpu.memory_space<vmem>>, %arg8: memref<24x32xf32, #tpu.memory_space<vmem>>) attributes {dimension_semantics = [], scalar_prefetch = 0 : i64, scratch_operands = 1 : i64, tpu.core_type = #tpu.core_type<tc>} {
    %0 = tpu.iota {dimensions = array<i32: 1>} : vector<4x128xi32>
    %c64_i32 = arith.constant 64 : i32
    %1 = vector.broadcast %c64_i32 : i32 to vector<4x128xi32>
    %2 = arith.cmpi sge, %0, %1 : vector<4x128xi32>
    %c96_i32 = arith.constant 96 : i32
    %3 = vector.broadcast %c96_i32 : i32 to vector<4x128xi32>
    %4 = arith.cmpi slt, %0, %3 : vector<4x128xi32>
    %5 = arith.andi %2, %4 : vector<4x128xi1>
    %c0 = arith.constant 0 : index
    %c0_0 = arith.constant 0 : index
    %6 = vector.load %arg2[%c0, %c0_0] : memref<32x128xf32, #tpu.memory_space<vmem>>, vector<32x128xf32>
    %c0_1 = arith.constant 0 : index
    %c0_2 = arith.constant 0 : index
    %7 = vector.load %arg5[%c0_1, %c0_2] : memref<32x128xf32, #tpu.memory_space<vmem>>, vector<32x128xf32>
    %c0_3 = arith.constant 0 : index
    %c0_4 = arith.constant 0 : index
    %8 = vector.load %arg3[%c0_3, %c0_4] : memref<1x128xf32, #tpu.memory_space<vmem>>, vector<1x128xf32>
    %c0_5 = arith.constant 0 : index
    %c0_6 = arith.constant 0 : index
    %9 = vector.load %arg6[%c0_5, %c0_6] : memref<1x128xf32, #tpu.memory_space<vmem>>, vector<1x128xf32>
    %c0_7 = arith.constant 0 : index
    %c0_8 = arith.constant 0 : index
    %10 = vector.load %arg0[%c0_7, %c0_8] : memref<24x32xf32, #tpu.memory_space<vmem>>, vector<24x32xf32>
    %c0_9 = arith.constant 0 : index
    %c0_10 = arith.constant 0 : index
    %11 = vector.load %arg1[%c0_9, %c0_10] : memref<32x128xf32, #tpu.memory_space<vmem>>, vector<32x128xf32>
    %cst = arith.constant dense<0.000000e+00> : vector<24x128xf32>
    %12 = tpu.matmul %10, %11, %cst {dimension_numbers = #tpu.dot_dimension_numbers<[1], [0], [0], [1], [0, 0, 1, 1], [], []>} : vector<24x32xf32>, vector<32x128xf32>, vector<24x128xf32> -> vector<24x128xf32>
    %13 = vector.broadcast %8 : vector<1x128xf32> to vector<24x128xf32>
    %14 = arith.addf %12, %13 : vector<24x128xf32>
    %cst_11 = arith.constant 0.000000e+00 : f32
    %15 = vector.broadcast %cst_11 : f32 to vector<4x32xf32>
    %16 = vector.extract_strided_slice %14 {offsets = [0, 0], sizes = [4, 128], strides = [1, 1]} : vector<24x128xf32> to vector<4x128xf32>
    %cst_12 = arith.constant dense<0.000000e+00> : vector<4x128xf32>
    %17 = tpu.matmul %15, %6, %cst_12 {dimension_numbers = #tpu.dot_dimension_numbers<[1], [0], [0], [1], [0, 0, 1, 1], [], []>} : vector<4x32xf32>, vector<32x128xf32>, vector<4x128xf32> -> vector<4x128xf32>
    %18 = arith.addf %16, %17 : vector<4x128xf32>
    %19 = math.tanh %18 : vector<4x128xf32>
    %20 = arith.negf %18 : vector<4x128xf32>
    %21 = math.exp %20 : vector<4x128xf32>
    %cst_13 = arith.constant 1.000000e+00 : f32
    %22 = vector.broadcast %cst_13 : f32 to vector<4x128xf32>
    %23 = arith.addf %22, %21 : vector<4x128xf32>
    %24 = arith.divf %22, %23 : vector<4x128xf32>
    %25 = arith.select %5, %19, %24 : vector<4x128xi1>, vector<4x128xf32>
    %26 = vector.extract_strided_slice %25 {offsets = [0, 0], sizes = [4, 32], strides = [1, 1]} : vector<4x128xf32> to vector<4x32xf32>
    %27 = vector.extract_strided_slice %25 {offsets = [0, 32], sizes = [4, 32], strides = [1, 1]} : vector<4x128xf32> to vector<4x32xf32>
    %28 = vector.extract_strided_slice %25 {offsets = [0, 64], sizes = [4, 32], strides = [1, 1]} : vector<4x128xf32> to vector<4x32xf32>
    %29 = vector.extract_strided_slice %25 {offsets = [0, 96], sizes = [4, 32], strides = [1, 1]} : vector<4x128xf32> to vector<4x32xf32>
    %30 = arith.mulf %27, %15 : vector<4x32xf32>
    %31 = arith.mulf %26, %28 : vector<4x32xf32>
    %32 = arith.addf %30, %31 : vector<4x32xf32>
    %33 = math.tanh %32 : vector<4x32xf32>
    %34 = arith.mulf %29, %33 : vector<4x32xf32>
    %c0_14 = arith.constant 0 : index
    %c0_15 = arith.constant 0 : index
    %35 = vector.load %arg8[%c0_14, %c0_15] : memref<24x32xf32, #tpu.memory_space<vmem>>, vector<4x32xf32>
    tpu.vector_store %arg8[%c0_14, %c0_15], %34 {strides = array<i32>} : memref<24x32xf32, #tpu.memory_space<vmem>>, vector<4x32xf32>,
    %36 = vector.extract_strided_slice %14 {offsets = [4, 0], sizes = [4, 128], strides = [1, 1]} : vector<24x128xf32> to vector<4x128xf32>
    %cst_16 = arith.constant dense<0.000000e+00> : vector<4x128xf32>
    %37 = tpu.matmul %34, %6, %cst_16 {dimension_numbers = #tpu.dot_dimension_numbers<[1], [0], [0], [1], [0, 0, 1, 1], [], []>} : vector<4x32xf32>, vector<32x128xf32>, vector<4x128xf32> -> vector<4x128xf32>
    %38 = arith.addf %36, %37 : vector<4x128xf32>
    %39 = math.tanh %38 : vector<4x128xf32>
    %40 = arith.negf %38 : vector<4x128xf32>
    %41 = math.exp %40 : vector<4x128xf32>
    %cst_17 = arith.constant 1.000000e+00 : f32
    %42 = vector.broadcast %cst_17 : f32 to vector<4x128xf32>
    %43 = arith.addf %42, %41 : vector<4x128xf32>
    %44 = arith.divf %42, %43 : vector<4x128xf32>
    %45 = arith.select %5, %39, %44 : vector<4x128xi1>, vector<4x128xf32>
    %46 = vector.extract_strided_slice %45 {offsets = [0, 0], sizes = [4, 32], strides = [1, 1]} : vector<4x128xf32> to vector<4x32xf32>
    %47 = vector.extract_strided_slice %45 {offsets = [0, 32], sizes = [4, 32], strides = [1, 1]} : vector<4x128xf32> to vector<4x32xf32>
    %48 = vector.extract_strided_slice %45 {offsets = [0, 64], sizes = [4, 32], strides = [1, 1]} : vector<4x128xf32> to vector<4x32xf32>
    %49 = vector.extract_strided_slice %45 {offsets = [0, 96], sizes = [4, 32], strides = [1, 1]} : vector<4x128xf32> to vector<4x32xf32>
    %50 = arith.mulf %47, %32 : vector<4x32xf32>
    %51 = arith.mulf %46, %48 : vector<4x32xf32>
    %52 = arith.addf %50, %51 : vector<4x32xf32>
    %53 = math.tanh %52 : vector<4x32xf32>
    %54 = arith.mulf %49, %53 : vector<4x32xf32>
    %c4 = arith.constant 4 : index
    %c0_18 = arith.constant 0 : index
    %55 = vector.load %arg8[%c4, %c0_18] : memref<24x32xf32, #tpu.memory_space<vmem>>, vector<4x32xf32>
    tpu.vector_store %arg8[%c4, %c0_18], %54 {strides = array<i32>} : memref<24x32xf32, #tpu.memory_space<vmem>>, vector<4x32xf32>,
    %56 = vector.extract_strided_slice %14 {offsets = [8, 0], sizes = [4, 128], strides = [1, 1]} : vector<24x128xf32> to vector<4x128xf32>
    %cst_19 = arith.constant dense<0.000000e+00> : vector<4x128xf32>
    %57 = tpu.matmul %54, %6, %cst_19 {dimension_numbers = #tpu.dot_dimension_numbers<[1], [0], [0], [1], [0, 0, 1, 1], [], []>} : vector<4x32xf32>, vector<32x128xf32>, vector<4x128xf32> -> vector<4x128xf32>
    %58 = arith.addf %56, %57 : vector<4x128xf32>
    %59 = math.tanh %58 : vector<4x128xf32>
    %60 = arith.negf %58 : vector<4x128xf32>
    %61 = math.exp %60 : vector<4x128xf32>
    %cst_20 = arith.constant 1.000000e+00 : f32
    %62 = vector.broadcast %cst_20 : f32 to vector<4x128xf32>
    %63 = arith.addf %62, %61 : vector<4x128xf32>
    %64 = arith.divf %62, %63 : vector<4x128xf32>
    %65 = arith.select %5, %59, %64 : vector<4x128xi1>, vector<4x128xf32>
    %66 = vector.extract_strided_slice %65 {offsets = [0, 0], sizes = [4, 32], strides = [1, 1]} : vector<4x128xf32> to vector<4x32xf32>
    %67 = vector.extract_strided_slice %65 {offsets = [0, 32], sizes = [4, 32], strides = [1, 1]} : vector<4x128xf32> to vector<4x32xf32>
    %68 = vector.extract_strided_slice %65 {offsets = [0, 64], sizes = [4, 32], strides = [1, 1]} : vector<4x128xf32> to vector<4x32xf32>
    %69 = vector.extract_strided_slice %65 {offsets = [0, 96], sizes = [4, 32], strides = [1, 1]} : vector<4x128xf32> to vector<4x32xf32>
    %70 = arith.mulf %67, %52 : vector<4x32xf32>
    %71 = arith.mulf %66, %68 : vector<4x32xf32>
    %72 = arith.addf %70, %71 : vector<4x32xf32>
    %73 = math.tanh %72 : vector<4x32xf32>
    %74 = arith.mulf %69, %73 : vector<4x32xf32>
    %c8 = arith.constant 8 : index
    %c0_21 = arith.constant 0 : index
    %75 = vector.load %arg8[%c8, %c0_21] : memref<24x32xf32, #tpu.memory_space<vmem>>, vector<4x32xf32>
    tpu.vector_store %arg8[%c8, %c0_21], %74 {strides = array<i32>} : memref<24x32xf32, #tpu.memory_space<vmem>>, vector<4x32xf32>,
    %76 = vector.extract_strided_slice %14 {offsets = [12, 0], sizes = [4, 128], strides = [1, 1]} : vector<24x128xf32> to vector<4x128xf32>
    %cst_22 = arith.constant dense<0.000000e+00> : vector<4x128xf32>
    %77 = tpu.matmul %74, %6, %cst_22 {dimension_numbers = #tpu.dot_dimension_numbers<[1], [0], [0], [1], [0, 0, 1, 1], [], []>} : vector<4x32xf32>, vector<32x128xf32>, vector<4x128xf32> -> vector<4x128xf32>
    %78 = arith.addf %76, %77 : vector<4x128xf32>
    %79 = math.tanh %78 : vector<4x128xf32>
    %80 = arith.negf %78 : vector<4x128xf32>
    %81 = math.exp %80 : vector<4x128xf32>
    %cst_23 = arith.constant 1.000000e+00 : f32
    %82 = vector.broadcast %cst_23 : f32 to vector<4x128xf32>
    %83 = arith.addf %82, %81 : vector<4x128xf32>
    %84 = arith.divf %82, %83 : vector<4x128xf32>
    %85 = arith.select %5, %79, %84 : vector<4x128xi1>, vector<4x128xf32>
    %86 = vector.extract_strided_slice %85 {offsets = [0, 0], sizes = [4, 32], strides = [1, 1]} : vector<4x128xf32> to vector<4x32xf32>
    %87 = vector.extract_strided_slice %85 {offsets = [0, 32], sizes = [4, 32], strides = [1, 1]} : vector<4x128xf32> to vector<4x32xf32>
    %88 = vector.extract_strided_slice %85 {offsets = [0, 64], sizes = [4, 32], strides = [1, 1]} : vector<4x128xf32> to vector<4x32xf32>
    %89 = vector.extract_strided_slice %85 {offsets = [0, 96], sizes = [4, 32], strides = [1, 1]} : vector<4x128xf32> to vector<4x32xf32>
    %90 = arith.mulf %87, %72 : vector<4x32xf32>
    %91 = arith.mulf %86, %88 : vector<4x32xf32>
    %92 = arith.addf %90, %91 : vector<4x32xf32>
    %93 = math.tanh %92 : vector<4x32xf32>
    %94 = arith.mulf %89, %93 : vector<4x32xf32>
    %c12 = arith.constant 12 : index
    %c0_24 = arith.constant 0 : index
    %95 = vector.load %arg8[%c12, %c0_24] : memref<24x32xf32, #tpu.memory_space<vmem>>, vector<4x32xf32>
    tpu.vector_store %arg8[%c12, %c0_24], %94 {strides = array<i32>} : memref<24x32xf32, #tpu.memory_space<vmem>>, vector<4x32xf32>,
    %96 = vector.extract_strided_slice %14 {offsets = [16, 0], sizes = [4, 128], strides = [1, 1]} : vector<24x128xf32> to vector<4x128xf32>
    %cst_25 = arith.constant dense<0.000000e+00> : vector<4x128xf32>
    %97 = tpu.matmul %94, %6, %cst_25 {dimension_numbers = #tpu.dot_dimension_numbers<[1], [0], [0], [1], [0, 0, 1, 1], [], []>} : vector<4x32xf32>, vector<32x128xf32>, vector<4x128xf32> -> vector<4x128xf32>
    %98 = arith.addf %96, %97 : vector<4x128xf32>
    %99 = math.tanh %98 : vector<4x128xf32>
    %100 = arith.negf %98 : vector<4x128xf32>
    %101 = math.exp %100 : vector<4x128xf32>
    %cst_26 = arith.constant 1.000000e+00 : f32
    %102 = vector.broadcast %cst_26 : f32 to vector<4x128xf32>
    %103 = arith.addf %102, %101 : vector<4x128xf32>
    %104 = arith.divf %102, %103 : vector<4x128xf32>
    %105 = arith.select %5, %99, %104 : vector<4x128xi1>, vector<4x128xf32>
    %106 = vector.extract_strided_slice %105 {offsets = [0, 0], sizes = [4, 32], strides = [1, 1]} : vector<4x128xf32> to vector<4x32xf32>
    %107 = vector.extract_strided_slice %105 {offsets = [0, 32], sizes = [4, 32], strides = [1, 1]} : vector<4x128xf32> to vector<4x32xf32>
    %108 = vector.extract_strided_slice %105 {offsets = [0, 64], sizes = [4, 32], strides = [1, 1]} : vector<4x128xf32> to vector<4x32xf32>
    %109 = vector.extract_strided_slice %105 {offsets = [0, 96], sizes = [4, 32], strides = [1, 1]} : vector<4x128xf32> to vector<4x32xf32>
    %110 = arith.mulf %107, %92 : vector<4x32xf32>
    %111 = arith.mulf %106, %108 : vector<4x32xf32>
    %112 = arith.addf %110, %111 : vector<4x32xf32>
    %113 = math.tanh %112 : vector<4x32xf32>
    %114 = arith.mulf %109, %113 : vector<4x32xf32>
    %c16 = arith.constant 16 : index
    %c0_27 = arith.constant 0 : index
    %115 = vector.load %arg8[%c16, %c0_27] : memref<24x32xf32, #tpu.memory_space<vmem>>, vector<4x32xf32>
    tpu.vector_store %arg8[%c16, %c0_27], %114 {strides = array<i32>} : memref<24x32xf32, #tpu.memory_space<vmem>>, vector<4x32xf32>,
    %116 = vector.extract_strided_slice %14 {offsets = [20, 0], sizes = [4, 128], strides = [1, 1]} : vector<24x128xf32> to vector<4x128xf32>
    %cst_28 = arith.constant dense<0.000000e+00> : vector<4x128xf32>
    %117 = tpu.matmul %114, %6, %cst_28 {dimension_numbers = #tpu.dot_dimension_numbers<[1], [0], [0], [1], [0, 0, 1, 1], [], []>} : vector<4x32xf32>, vector<32x128xf32>, vector<4x128xf32> -> vector<4x128xf32>
    %118 = arith.addf %116, %117 : vector<4x128xf32>
    %119 = math.tanh %118 : vector<4x128xf32>
    %120 = arith.negf %118 : vector<4x128xf32>
    %121 = math.exp %120 : vector<4x128xf32>
    %cst_29 = arith.constant 1.000000e+00 : f32
    %122 = vector.broadcast %cst_29 : f32 to vector<4x128xf32>
    %123 = arith.addf %122, %121 : vector<4x128xf32>
    %124 = arith.divf %122, %123 : vector<4x128xf32>
    %125 = arith.select %5, %119, %124 : vector<4x128xi1>, vector<4x128xf32>
    %126 = vector.extract_strided_slice %125 {offsets = [0, 0], sizes = [4, 32], strides = [1, 1]} : vector<4x128xf32> to vector<4x32xf32>
    %127 = vector.extract_strided_slice %125 {offsets = [0, 32], sizes = [4, 32], strides = [1, 1]} : vector<4x128xf32> to vector<4x32xf32>
    %128 = vector.extract_strided_slice %125 {offsets = [0, 64], sizes = [4, 32], strides = [1, 1]} : vector<4x128xf32> to vector<4x32xf32>
    %129 = vector.extract_strided_slice %125 {offsets = [0, 96], sizes = [4, 32], strides = [1, 1]} : vector<4x128xf32> to vector<4x32xf32>
    %130 = arith.mulf %127, %112 : vector<4x32xf32>
    %131 = arith.mulf %126, %128 : vector<4x32xf32>
    %132 = arith.addf %130, %131 : vector<4x32xf32>
    %133 = math.tanh %132 : vector<4x32xf32>
    %134 = arith.mulf %129, %133 : vector<4x32xf32>
    %c20 = arith.constant 20 : index
    %c0_30 = arith.constant 0 : index
    %135 = vector.load %arg8[%c20, %c0_30] : memref<24x32xf32, #tpu.memory_space<vmem>>, vector<4x32xf32>
    tpu.vector_store %arg8[%c20, %c0_30], %134 {strides = array<i32>} : memref<24x32xf32, #tpu.memory_space<vmem>>, vector<4x32xf32>,
    %c0_31 = arith.constant 0 : index
    %c0_32 = arith.constant 0 : index
    %136 = vector.load %arg8[%c0_31, %c0_32] : memref<24x32xf32, #tpu.memory_space<vmem>>, vector<24x32xf32>
    %c0_33 = arith.constant 0 : index
    %c0_34 = arith.constant 0 : index
    %137 = vector.load %arg4[%c0_33, %c0_34] : memref<32x128xf32, #tpu.memory_space<vmem>>, vector<32x128xf32>
    %cst_35 = arith.constant dense<0.000000e+00> : vector<24x128xf32>
    %138 = tpu.matmul %136, %137, %cst_35 {dimension_numbers = #tpu.dot_dimension_numbers<[1], [0], [0], [1], [0, 0, 1, 1], [], []>} : vector<24x32xf32>, vector<32x128xf32>, vector<24x128xf32> -> vector<24x128xf32>
    %139 = vector.broadcast %9 : vector<1x128xf32> to vector<24x128xf32>
    %140 = arith.addf %138, %139 : vector<24x128xf32>
    %141 = vector.extract_strided_slice %140 {offsets = [0, 0], sizes = [4, 128], strides = [1, 1]} : vector<24x128xf32> to vector<4x128xf32>
    %cst_36 = arith.constant dense<0.000000e+00> : vector<4x128xf32>
    %142 = tpu.matmul %15, %7, %cst_36 {dimension_numbers = #tpu.dot_dimension_numbers<[1], [0], [0], [1], [0, 0, 1, 1], [], []>} : vector<4x32xf32>, vector<32x128xf32>, vector<4x128xf32> -> vector<4x128xf32>
    %143 = arith.addf %141, %142 : vector<4x128xf32>
    %144 = math.tanh %143 : vector<4x128xf32>
    %145 = arith.negf %143 : vector<4x128xf32>
    %146 = math.exp %145 : vector<4x128xf32>
    %cst_37 = arith.constant 1.000000e+00 : f32
    %147 = vector.broadcast %cst_37 : f32 to vector<4x128xf32>
    %148 = arith.addf %147, %146 : vector<4x128xf32>
    %149 = arith.divf %147, %148 : vector<4x128xf32>
    %150 = arith.select %5, %144, %149 : vector<4x128xi1>, vector<4x128xf32>
    %151 = vector.extract_strided_slice %150 {offsets = [0, 0], sizes = [4, 32], strides = [1, 1]} : vector<4x128xf32> to vector<4x32xf32>
    %152 = vector.extract_strided_slice %150 {offsets = [0, 32], sizes = [4, 32], strides = [1, 1]} : vector<4x128xf32> to vector<4x32xf32>
    %153 = vector.extract_strided_slice %150 {offsets = [0, 64], sizes = [4, 32], strides = [1, 1]} : vector<4x128xf32> to vector<4x32xf32>
    %154 = vector.extract_strided_slice %150 {offsets = [0, 96], sizes = [4, 32], strides = [1, 1]} : vector<4x128xf32> to vector<4x32xf32>
    %155 = arith.mulf %152, %15 : vector<4x32xf32>
    %156 = arith.mulf %151, %153 : vector<4x32xf32>
    %157 = arith.addf %155, %156 : vector<4x32xf32>
    %158 = math.tanh %157 : vector<4x32xf32>
    %159 = arith.mulf %154, %158 : vector<4x32xf32>
    %160 = vector.extract_strided_slice %140 {offsets = [4, 0], sizes = [4, 128], strides = [1, 1]} : vector<24x128xf32> to vector<4x128xf32>
    %cst_38 = arith.constant dense<0.000000e+00> : vector<4x128xf32>
    %161 = tpu.matmul %159, %7, %cst_38 {dimension_numbers = #tpu.dot_dimension_numbers<[1], [0], [0], [1], [0, 0, 1, 1], [], []>} : vector<4x32xf32>, vector<32x128xf32>, vector<4x128xf32> -> vector<4x128xf32>
    %162 = arith.addf %160, %161 : vector<4x128xf32>
    %163 = math.tanh %162 : vector<4x128xf32>
    %164 = arith.negf %162 : vector<4x128xf32>
    %165 = math.exp %164 : vector<4x128xf32>
    %cst_39 = arith.constant 1.000000e+00 : f32
    %166 = vector.broadcast %cst_39 : f32 to vector<4x128xf32>
    %167 = arith.addf %166, %165 : vector<4x128xf32>
    %168 = arith.divf %166, %167 : vector<4x128xf32>
    %169 = arith.select %5, %163, %168 : vector<4x128xi1>, vector<4x128xf32>
    %170 = vector.extract_strided_slice %169 {offsets = [0, 0], sizes = [4, 32], strides = [1, 1]} : vector<4x128xf32> to vector<4x32xf32>
    %171 = vector.extract_strided_slice %169 {offsets = [0, 32], sizes = [4, 32], strides = [1, 1]} : vector<4x128xf32> to vector<4x32xf32>
    %172 = vector.extract_strided_slice %169 {offsets = [0, 64], sizes = [4, 32], strides = [1, 1]} : vector<4x128xf32> to vector<4x32xf32>
    %173 = vector.extract_strided_slice %169 {offsets = [0, 96], sizes = [4, 32], strides = [1, 1]} : vector<4x128xf32> to vector<4x32xf32>
    %174 = arith.mulf %171, %157 : vector<4x32xf32>
    %175 = arith.mulf %170, %172 : vector<4x32xf32>
    %176 = arith.addf %174, %175 : vector<4x32xf32>
    %177 = math.tanh %176 : vector<4x32xf32>
    %178 = arith.mulf %173, %177 : vector<4x32xf32>
    %179 = vector.extract_strided_slice %140 {offsets = [8, 0], sizes = [4, 128], strides = [1, 1]} : vector<24x128xf32> to vector<4x128xf32>
    %cst_40 = arith.constant dense<0.000000e+00> : vector<4x128xf32>
    %180 = tpu.matmul %178, %7, %cst_40 {dimension_numbers = #tpu.dot_dimension_numbers<[1], [0], [0], [1], [0, 0, 1, 1], [], []>} : vector<4x32xf32>, vector<32x128xf32>, vector<4x128xf32> -> vector<4x128xf32>
    %181 = arith.addf %179, %180 : vector<4x128xf32>
    %182 = math.tanh %181 : vector<4x128xf32>
    %183 = arith.negf %181 : vector<4x128xf32>
    %184 = math.exp %183 : vector<4x128xf32>
    %cst_41 = arith.constant 1.000000e+00 : f32
    %185 = vector.broadcast %cst_41 : f32 to vector<4x128xf32>
    %186 = arith.addf %185, %184 : vector<4x128xf32>
    %187 = arith.divf %185, %186 : vector<4x128xf32>
    %188 = arith.select %5, %182, %187 : vector<4x128xi1>, vector<4x128xf32>
    %189 = vector.extract_strided_slice %188 {offsets = [0, 0], sizes = [4, 32], strides = [1, 1]} : vector<4x128xf32> to vector<4x32xf32>
    %190 = vector.extract_strided_slice %188 {offsets = [0, 32], sizes = [4, 32], strides = [1, 1]} : vector<4x128xf32> to vector<4x32xf32>
    %191 = vector.extract_strided_slice %188 {offsets = [0, 64], sizes = [4, 32], strides = [1, 1]} : vector<4x128xf32> to vector<4x32xf32>
    %192 = vector.extract_strided_slice %188 {offsets = [0, 96], sizes = [4, 32], strides = [1, 1]} : vector<4x128xf32> to vector<4x32xf32>
    %193 = arith.mulf %190, %176 : vector<4x32xf32>
    %194 = arith.mulf %189, %191 : vector<4x32xf32>
    %195 = arith.addf %193, %194 : vector<4x32xf32>
    %196 = math.tanh %195 : vector<4x32xf32>
    %197 = arith.mulf %192, %196 : vector<4x32xf32>
    %198 = vector.extract_strided_slice %140 {offsets = [12, 0], sizes = [4, 128], strides = [1, 1]} : vector<24x128xf32> to vector<4x128xf32>
    %cst_42 = arith.constant dense<0.000000e+00> : vector<4x128xf32>
    %199 = tpu.matmul %197, %7, %cst_42 {dimension_numbers = #tpu.dot_dimension_numbers<[1], [0], [0], [1], [0, 0, 1, 1], [], []>} : vector<4x32xf32>, vector<32x128xf32>, vector<4x128xf32> -> vector<4x128xf32>
    %200 = arith.addf %198, %199 : vector<4x128xf32>
    %201 = math.tanh %200 : vector<4x128xf32>
    %202 = arith.negf %200 : vector<4x128xf32>
    %203 = math.exp %202 : vector<4x128xf32>
    %cst_43 = arith.constant 1.000000e+00 : f32
    %204 = vector.broadcast %cst_43 : f32 to vector<4x128xf32>
    %205 = arith.addf %204, %203 : vector<4x128xf32>
    %206 = arith.divf %204, %205 : vector<4x128xf32>
    %207 = arith.select %5, %201, %206 : vector<4x128xi1>, vector<4x128xf32>
    %208 = vector.extract_strided_slice %207 {offsets = [0, 0], sizes = [4, 32], strides = [1, 1]} : vector<4x128xf32> to vector<4x32xf32>
    %209 = vector.extract_strided_slice %207 {offsets = [0, 32], sizes = [4, 32], strides = [1, 1]} : vector<4x128xf32> to vector<4x32xf32>
    %210 = vector.extract_strided_slice %207 {offsets = [0, 64], sizes = [4, 32], strides = [1, 1]} : vector<4x128xf32> to vector<4x32xf32>
    %211 = vector.extract_strided_slice %207 {offsets = [0, 96], sizes = [4, 32], strides = [1, 1]} : vector<4x128xf32> to vector<4x32xf32>
    %212 = arith.mulf %209, %195 : vector<4x32xf32>
    %213 = arith.mulf %208, %210 : vector<4x32xf32>
    %214 = arith.addf %212, %213 : vector<4x32xf32>
    %215 = math.tanh %214 : vector<4x32xf32>
    %216 = arith.mulf %211, %215 : vector<4x32xf32>
    %217 = vector.extract_strided_slice %140 {offsets = [16, 0], sizes = [4, 128], strides = [1, 1]} : vector<24x128xf32> to vector<4x128xf32>
    %cst_44 = arith.constant dense<0.000000e+00> : vector<4x128xf32>
    %218 = tpu.matmul %216, %7, %cst_44 {dimension_numbers = #tpu.dot_dimension_numbers<[1], [0], [0], [1], [0, 0, 1, 1], [], []>} : vector<4x32xf32>, vector<32x128xf32>, vector<4x128xf32> -> vector<4x128xf32>
    %219 = arith.addf %217, %218 : vector<4x128xf32>
    %220 = math.tanh %219 : vector<4x128xf32>
    %221 = arith.negf %219 : vector<4x128xf32>
    %222 = math.exp %221 : vector<4x128xf32>
    %cst_45 = arith.constant 1.000000e+00 : f32
    %223 = vector.broadcast %cst_45 : f32 to vector<4x128xf32>
    %224 = arith.addf %223, %222 : vector<4x128xf32>
    %225 = arith.divf %223, %224 : vector<4x128xf32>
    %226 = arith.select %5, %220, %225 : vector<4x128xi1>, vector<4x128xf32>
    %227 = vector.extract_strided_slice %226 {offsets = [0, 0], sizes = [4, 32], strides = [1, 1]} : vector<4x128xf32> to vector<4x32xf32>
    %228 = vector.extract_strided_slice %226 {offsets = [0, 32], sizes = [4, 32], strides = [1, 1]} : vector<4x128xf32> to vector<4x32xf32>
    %229 = vector.extract_strided_slice %226 {offsets = [0, 64], sizes = [4, 32], strides = [1, 1]} : vector<4x128xf32> to vector<4x32xf32>
    %230 = vector.extract_strided_slice %226 {offsets = [0, 96], sizes = [4, 32], strides = [1, 1]} : vector<4x128xf32> to vector<4x32xf32>
    %231 = arith.mulf %228, %214 : vector<4x32xf32>
    %232 = arith.mulf %227, %229 : vector<4x32xf32>
    %233 = arith.addf %231, %232 : vector<4x32xf32>
    %234 = math.tanh %233 : vector<4x32xf32>
    %235 = arith.mulf %230, %234 : vector<4x32xf32>
    %236 = vector.extract_strided_slice %140 {offsets = [20, 0], sizes = [4, 128], strides = [1, 1]} : vector<24x128xf32> to vector<4x128xf32>
    %cst_46 = arith.constant dense<0.000000e+00> : vector<4x128xf32>
    %237 = tpu.matmul %235, %7, %cst_46 {dimension_numbers = #tpu.dot_dimension_numbers<[1], [0], [0], [1], [0, 0, 1, 1], [], []>} : vector<4x32xf32>, vector<32x128xf32>, vector<4x128xf32> -> vector<4x128xf32>
    %238 = arith.addf %236, %237 : vector<4x128xf32>
    %239 = math.tanh %238 : vector<4x128xf32>
    %240 = arith.negf %238 : vector<4x128xf32>
    %241 = math.exp %240 : vector<4x128xf32>
    %cst_47 = arith.constant 1.000000e+00 : f32
    %242 = vector.broadcast %cst_47 : f32 to vector<4x128xf32>
    %243 = arith.addf %242, %241 : vector<4x128xf32>
    %244 = arith.divf %242, %243 : vector<4x128xf32>
    %245 = arith.select %5, %239, %244 : vector<4x128xi1>, vector<4x128xf32>
    %246 = vector.extract_strided_slice %245 {offsets = [0, 0], sizes = [4, 32], strides = [1, 1]} : vector<4x128xf32> to vector<4x32xf32>
    %247 = vector.extract_strided_slice %245 {offsets = [0, 32], sizes = [4, 32], strides = [1, 1]} : vector<4x128xf32> to vector<4x32xf32>
    %248 = vector.extract_strided_slice %245 {offsets = [0, 64], sizes = [4, 32], strides = [1, 1]} : vector<4x128xf32> to vector<4x32xf32>
    %249 = vector.extract_strided_slice %245 {offsets = [0, 96], sizes = [4, 32], strides = [1, 1]} : vector<4x128xf32> to vector<4x32xf32>
    %250 = arith.mulf %247, %233 : vector<4x32xf32>
    %251 = arith.mulf %246, %248 : vector<4x32xf32>
    %252 = arith.addf %250, %251 : vector<4x32xf32>
    %253 = math.tanh %252 : vector<4x32xf32>
    %254 = arith.mulf %249, %253 : vector<4x32xf32>
    %c0_48 = arith.constant 0 : index
    %c0_49 = arith.constant 0 : index
    %255 = vector.load %arg7[%c0_48, %c0_49] : memref<4x32xf32, #tpu.memory_space<vmem>>, vector<4x32xf32>
    tpu.vector_store %arg7[%c0_48, %c0_49], %254 {strides = array<i32>} : memref<4x32xf32, #tpu.memory_space<vmem>>, vector<4x32xf32>,
    return
  }
}

</mosaic_0001>

<bundles_post_ra>
// kernel: lstm_forward.1
= control target key start
LH: loop header
LB: loop body
LE: loop exit
PB: predicated region body
PF: predicated region fallthrough
CT: control target
= control target key end

     0   :  { %12 = vsyncpa [#allocation4], 0  ;;  %s2377_s0 = inlined_call_operand.vmem [shape: f32[24,32], index: 0, kind: input, shape index: {}]   ;;  %s2378_s1 = inlined_call_operand.vmem [shape: f32[32,128], index: 1, kind: input, shape index: {}]   ;;  %s2379_s2 = inlined_call_operand.vmem [shape: f32[32,128], index: 2, kind: input, shape index: {}]   ;;  %s2380_s3 = inlined_call_operand.vmem [shape: f32[1,128], index: 3, kind: input, shape index: {}]   ;;  %s2381_s4 = inlined_call_operand.vmem [shape: f32[32,128], index: 4, kind: input, shape index: {}]   ;;  %s2382_s5 = inlined_call_operand.hbm [shape: f32[32,128], index: 5, kind: input, shape index: {}]   ;;  %s2383_s6 = inlined_call_operand.vmem [shape: f32[1,128], index: 6, kind: input, shape index: {}]   ;;  %s2384_s7 = inlined_call_operand.hbm [shape: f32[4,32], index: 7, kind: output, shape index: {}]  }
   0x1   :  { %13 = vsyncpa [#allocation5], 0  ;;  %s1977_s24 = smov [#allocation3]  }
   0x2   :  { %s29_s25 = sshll.u32 %s1977_s24, 4  ;;  %s30_s25 = int_to_ptr.vmem [resolvable:$true] %s29_s25 }
   0x3   :  { %s1941_s26 = scalar_lea.vmem %s30_s25, 512  ;;  %p1946_p1 = scmp.lt.s32.totalorder %s30_s25, %s30_s25 }
   0x4   :  { %p1942_p0 = scmp.ne.s32.totalorder %s30_s25, %s1941_s26  ;;  %p1947_p2 = scmp.lt.s32.totalorder %s1941_s26, %s1941_s26 }
   0x6   :  { %p1948_p3 = por %p1947_p2, %p1946_p1 }
   0x8   :  { %p1949_p4 = pnand %p1948_p3, %p1942_p0 }
   0xa   :  { %1952 = shalt.err (!%p1949_p4)
}
   0xb   :  { %s1978_s27 = smov 128   ;;  %s1979_s28 = smov 8  }
   0xc   :  { %35 = dma.hbm_to_vmem [thread:$0]  %s2382_s5, 512, %s30_s25, [#allocation4], %s1978_s27, %s1978_s27, %s1979_s28  }
   0xd   :  { %1973 = dma.done.wait [#allocation4], 512  }
   0xe   :  { %1974 = vsyncadd [#allocation4], 4294966784  ;;  %v1980_v0 = vmov 0.0   ;;  %vm1981_vm0 = vmmov 0   ;;  %v62_v1 = vld [vmem:[%s2378_s1 + $0x18] sm:$0xff]  ;;  %v61_v3 = vld [vmem:[%s2378_s1 + $0x10] sm:$0xff]  ;;  %v41_v20 = vlaneseq }
   0xf   :  { %1663 = vmatprep.subr.mxu0 %v1980_v0  ;;  %1680 = vmatprep.subr.mxu1 %v1980_v0  ;;  %v2040_v2 = vld [vmem:[%s2379_s2 + $0x18] sm:$0xff]  ;;  %v2049_v4 = vld [vmem:[%s2379_s2 + $0x10] sm:$0xff]  ;;  %v60_v5 = vld [vmem:[%s2378_s1 + $0x8] sm:$0xff]  ;;  %vm69_vm1 = vcmask 261120   ;;  %s1983_s25 = smov 32   ;;  %vm262_vm5 = vcmask 257024  }
  0x10   :  { %1671 = vmatprep.mubr.msk.f32.mxu0 %vm1981_vm0, %v1980_v0  ;;  %1688 = vmatprep.mubr.msk.f32.mxu1 %vm1981_vm0, %v1980_v0  ;;  %v2059_v6 = vld [vmem:[%s2379_s2 + $0x8] sm:$0xff]  ;;  %v59_v7 = vld [vmem:[%s2378_s1] sm:$0xff]  ;;  %v42_v21 = vand.u32 127, %v41_v20  ;;  %v58_v52 = vld [vmem:[%s2377_s0 + $0x10] sm:$0xff]  ;;  %vm372_vm6 = vcmask 261124  }
  0x11   :  { %1664 = vmatpush3.msra.mxu0 %v62_v1  ;;  %1681 = vmatpush3.msra.mxu1 %v2040_v2  ;;  %v2070_v8 = vld [vmem:[%s2379_s2] sm:$0xff]  ;;  %v57_v51 = vld [vmem:[%s2377_s0 + $0x8] sm:$0xff] }
  0x12   :  { %1665 = vmatprep.subr.mxu0 %v1980_v0  ;;  %1682 = vmatprep.subr.mxu1 %v1980_v0  ;;  %v56_v9 = vld [vmem:[%s2377_s0] sm:$0xff]  ;;  %vm43_vm2 = vcmp.ge.s32.totalorder %v42_v21, 64  ;;  %vm44_vm3 = vcmp.lt.s32.totalorder %v42_v21, 96 }
  0x13   :  { %1666 = vmatpush3.msra.mxu0 %v61_v3  ;;  %1683 = vmatpush3.msra.mxu1 %v2049_v4  ;;  %v2106_v10 = vld [vmem:[%s2380_s3] ss:$0 sm:$0xff]  ;;  %vm2109_vm4 = vmand %vm43_vm2, %vm44_vm3  ;;  %s1982_s3 = smov 64  }
  0x14   :  { %1667 = vmatprep.subr.mxu0 %v1980_v0  ;;  %1684 = vmatprep.subr.mxu1 %v1980_v0 }
  0x15   :  { %1668 = vmatpush3.msra.mxu0 %v60_v5  ;;  %1685 = vmatpush3.msra.mxu1 %v2059_v6 }
  0x16   :  { %1669 = vmatprep.subr.mxu0 %v1980_v0  ;;  %1686 = vmatprep.subr.mxu1 %v1980_v0 }
  0x17   :  { %1670 = vmatpush3.msra.mxu0 %v59_v7  ;;  %1687 = vmatpush3.msra.mxu1 %v2070_v8 }
  0x18   :  { %1672 = vmatmul.mubr.msk.f32.vlgmr.msra.gmra.mxu0 %vm69_vm1, %v56_v9  ;;  %1689 = vmatmul.mubr.f32.vlgmr.msra.gmra.mxu1 %v1980_v0 }
  0x19   :  { %1691 = vmatprep.subr.mxu1 %v1980_v0  ;;  %1699 = vmatprep.mubr.msk.f32.mxu1 %vm1981_vm0, %v1980_v0 }
  0x1a   :  { %1692 = vmatpush3.msra.mxu1 %v2040_v2  ;;  %1702 = vmatprep.subr.mxu0 %v1980_v0 }
  0x1b   :  { %1693 = vmatprep.subr.mxu1 %v1980_v0  ;;  %1703 = vmatpush3.msra.mxu0 %v2040_v2 }
  0x1c   :  { %1694 = vmatpush3.msra.mxu1 %v2049_v4  ;;  %1674 = vmatprep.mubr.msk.f32.mxu0 %vm1981_vm0, %v1980_v0 }
  0x1d   :  { %1695 = vmatprep.subr.mxu1 %v1980_v0  ;;  %1704 = vmatprep.subr.mxu0 %v1980_v0 }
  0x1e   :  { %1696 = vmatpush3.msra.mxu1 %v2059_v6  ;;  %1705 = vmatpush3.msra.mxu0 %v2049_v4 }
  0x1f   :  { %1697 = vmatprep.subr.mxu1 %v1980_v0  ;;  %1706 = vmatprep.subr.mxu0 %v1980_v0 }
  0x20   :  { %1698 = vmatpush3.msra.mxu1 %v2070_v8  ;;  %1707 = vmatpush3.msra.mxu0 %v2059_v6 }
  0x21   :  { %1708 = vmatprep.subr.mxu0 %v1980_v0  ;;  %1713 = vmatprep.subr.mxu1 %v1980_v0 }
  0x22   :  { %1709 = vmatpush3.msra.mxu0 %v2070_v8 }
  0x23   :  { %1724 = vmatprep.subr.mxu0 %v1980_v0  ;;  %1675 = vmatmul.mubr.msk.f32.gmra.mxu0 %vm69_vm1, %v57_v51 }
  0x24   :  { %1677 = vmatprep.mubr.msk.f32.mxu0 %vm1981_vm0, %v1980_v0 }
  0x27   :  { %1678 = vmatmul.mubr.msk.f32.gmra.mxu0 %vm69_vm1, %v58_v52 }
  0x28   :  { %1710 = vmatprep.mubr.msk.f32.mxu0 %vm1981_vm0, %v1980_v0 }
  0xd8   :  { %v145_v11 = vpop.f32.mrf.mxu0  ;;  %v228_v12 = vpop.f32.mrf.mxu1 }
  0xd9   :  { %v146_v13 = vadd.f32 %v2106_v10, %v145_v11 }
  0xda   :  { %v1673_v14 = vpop.f32.mrf.mxu0  ;;  %v1690_v15 = vpop.f32.mrf.mxu1 }
  0xdb   :  { %v232_v16 = vadd.f32 %v228_v12, %v146_v13 }
  0xdd   :  { %v1563_v17 = vmul.f32 -1.442695, %v232_v16 }
  0xdf   :  { %1837 = vpow2.f32 %v1563_v17 }
  0xe0   :  { %1839 = vtanh.f32 %v232_v16 }
  0xe3   :  { %v150_v57 = vpop.f32.mrf.mxu0 }
  0xe4   :  { %v151_v62 = vadd.f32 %v2106_v10, %v150_v57 }
  0xe5   :  { %v1676_v58 = vpop.f32.mrf.mxu0 }
  0xe6   :  { %v816_v58 = vld [vmem:[%s2381_s4 + $0x18] sm:$0xff] }
  0xe7   :  { %v2152_v59 = vpop.f32.mrf.mxu0 }
  0xe9   :  { %v1679_v60 = vpop.f32.mrf.mxu0 }
  0xea   :  { %v814_v60 = vld [vmem:[%s2381_s4 + $0x8] sm:$0xff] }
  0xec   :  { %v1838_v18 = vpop.eup %1837 }
  0xed   :  { %v237_v19 = vadd.f32 1.0, %v1838_v18  ;;  %v1840_v23 = vpop.eup %1839 }
  0xef   :  { %1841 = vrcp.f32 %v237_v19 }
  0xfc   :  { %v1842_v24 = vpop.eup %1841 }
  0xfd   :  { %v240_v25 = vsel %vm2109_vm4, %v1840_v23, %v1842_v24 }
  0xfe   :  { %243 = vrot.lane.b32.xlu0 %v240_v25, %s1982_s3  ;;  %v241_v28 = vmul.f32 0.0, %v240_v25 }
 0x170   :  { %v244_v26 = vpop.permute.xlu0 %243 }
 0x171   :  { %v246_v27 = vmul.f32 %v244_v26, %v240_v25 }
 0x173   :  { %248 = vrot.lane.b32.xlu0 %v246_v27, %s1983_s25 }
 0x1e5   :  { %v249_v29 = vpop.permute.xlu0 %248 }
 0x1e6   :  { %v251_v30 = vadd.f32 %v249_v29, %v241_v28 }
 0x1e8   :  { %1843 = vtanh.f32 %v251_v30  ;;  %v349_v47 = vrot.slane %v251_v30, 4 }
 0x1f5   :  { %v1844_v31 = vpop.eup %1843 }
 0x1f6   :  { %254 = vrot.lane.b32.xlu1 %v1844_v31, %s1982_s3 }
 0x268   :  { %v255_v32 = vpop.permute.xlu1 %254 }
 0x269   :  { %v257_v33 = vmul.f32 %v255_v32, %v240_v25 }
 0x26b   :  { %259 = vrot.lane.b32.xlu1 %v257_v33, %s1983_s25 }
 0x2dd   :  { %v260_v34 = vpop.permute.xlu1 %259 }
 0x2de   :  { %263 = vst.msk [vmem:[#allocation2] sm:$0xf] %vm262_vm5, %v260_v34  ;;  %1700 = vmatmul.mubr.msk.f32.vlgmr.msra.gmra.mxu1 %vm69_vm1, %v260_v34 }
 0x2df   :  { %1714 = vmatpush3.msra.mxu1 %v2040_v2  ;;  %1721 = vmatprep.mubr.msk.f32.mxu1 %vm1981_vm0, %v1980_v0 }
 0x2e0   :  { %1715 = vmatprep.subr.mxu1 %v1980_v0 }
 0x2e1   :  { %1716 = vmatpush3.msra.mxu1 %v2049_v4 }
 0x2e2   :  { %1717 = vmatprep.subr.mxu1 %v1980_v0 }
 0x2e3   :  { %1718 = vmatpush3.msra.mxu1 %v2059_v6 }
 0x2e4   :  { %1719 = vmatprep.subr.mxu1 %v1980_v0 }
 0x2e5   :  { %1720 = vmatpush3.msra.mxu1 %v2070_v8 }
 0x2e6   :  { %1735 = vmatprep.subr.mxu1 %v1980_v0 }
 0x39e   :  { %v332_v35 = vpop.f32.mrf.mxu1 }
 0x39f   :  { %v337_v36 = vrot.slane %v332_v35, 4 }
 0x3a0   :  { %v1701_v37 = vpop.f32.mrf.mxu1 }
 0x3a1   :  { %v339_v38 = vadd.f32 %v337_v36, %v146_v13 }
 0x3a3   :  { %v1565_v39 = vmul.f32 -1.442695, %v339_v38 }
 0x3a5   :  { %1845 = vpow2.f32 %v1565_v39 }
 0x3a6   :  { %1847 = vtanh.f32 %v339_v38 }
 0x3b2   :  { %v1846_v40 = vpop.eup %1845 }
 0x3b3   :  { %v344_v41 = vadd.f32 1.0, %v1846_v40  ;;  %v1848_v42 = vpop.eup %1847 }
 0x3b5   :  { %1849 = vrcp.f32 %v344_v41 }
 0x3c2   :  { %v1850_v43 = vpop.eup %1849 }
 0x3c3   :  { %v347_v44 = vsel %vm2109_vm4, %v1848_v42, %v1850_v43  ;;  %v2198_v42 = vadd.f32 %v2106_v10, %v2152_v59  ;;  %v815_v59 = vld [vmem:[%s2381_s4 + $0x10] sm:$0xff] }
 0x3c4   :  { %353 = vrot.lane.b32.xlu0 %v347_v44, %s1982_s3  ;;  %v351_v48 = vmul.f32 %v349_v47, %v347_v44 }
 0x436   :  { %v354_v45 = vpop.permute.xlu0 %353 }
 0x437   :  { %v356_v46 = vmul.f32 %v354_v45, %v347_v44 }
 0x439   :  { %358 = vrot.lane.b32.xlu1 %v356_v46, %s1983_s25 }
 0x4ab   :  { %v359_v49 = vpop.permute.xlu1 %358 }
 0x4ac   :  { %v361_v50 = vadd.f32 %v359_v49, %v351_v48 }
 0x4ae   :  { %1851 = vtanh.f32 %v361_v50  ;;  %v459_v16 = vrot.slane %v361_v50, 4 }
 0x4bb   :  { %v1852_v53 = vpop.eup %1851 }
 0x4bc   :  { %364 = vrot.lane.b32.xlu0 %v1852_v53, %s1982_s3 }
 0x52e   :  { %v365_v54 = vpop.permute.xlu0 %364 }
 0x52f   :  { %v2148_v55 = vmul.f32 %v365_v54, %v347_v44 }
 0x531   :  { %v374_v56 = vrot.slane %v2148_v55, 4 }
 0x533   :  { %375 = vrot.lane.b32.xlu1 %v374_v56, %s1983_s25 }
 0x5a5   :  { %v376_v61 = vpop.permute.xlu1 %375 }
 0x5a6   :  { %1711 = vmatmul.mubr.msk.f32.vlgmr.msra.gmra.mxu0 %vm69_vm1, %v376_v61  ;;  %v813_v61 = vld [vmem:[%s2381_s4] sm:$0xff] }
 0x5a7   :  { %1725 = vmatpush3.msra.mxu0 %v2040_v2  ;;  %1732 = vmatprep.mubr.msk.f32.mxu0 %vm1981_vm0, %v1980_v0 }
 0x5a8   :  { %1726 = vmatprep.subr.mxu0 %v1980_v0 }
 0x5a9   :  { %1727 = vmatpush3.msra.mxu0 %v2049_v4 }
 0x5aa   :  { %1728 = vmatprep.subr.mxu0 %v1980_v0 }
 0x5ab   :  { %1729 = vmatpush3.msra.mxu0 %v2059_v6 }
 0x5ac   :  { %1730 = vmatprep.subr.mxu0 %v1980_v0 }
 0x5ad   :  { %1731 = vmatpush3.msra.mxu0 %v2070_v8 }
 0x5ae   :  { %1746 = vmatprep.subr.mxu0 %v1980_v0 }
 0x666   :  { %v445_v63 = vpop.f32.mrf.mxu0 }
 0x667   :  { %v449_v1 = vadd.f32 %v445_v63, %v151_v62 }
 0x668   :  { %v1712_v3 = vpop.f32.mrf.mxu0 }
 0x669   :  { %v1567_v5 = vmul.f32 -1.442695, %v449_v1 }
 0x66b   :  { %1853 = vpow2.f32 %v1567_v5 }
 0x66c   :  { %1855 = vtanh.f32 %v449_v1 }
 0x678   :  { %v1854_v7 = vpop.eup %1853 }
 0x679   :  { %v454_v9 = vadd.f32 1.0, %v1854_v7  ;;  %v1856_v11 = vpop.eup %1855  ;;  %v2230_v7 = vld [vmem:[#allocation3 + $0x18] sm:$0xff] }
 0x67b   :  { %1857 = vrcp.f32 %v454_v9  ;;  %v2235_v9 = vld [vmem:[#allocation3 + $0x10] sm:$0xff] }
 0x688   :  { %v1858_v12 = vpop.eup %1857 }
 0x689   :  { %v457_v13 = vsel %vm2109_vm4, %v1856_v11, %v1858_v12  ;;  %v2243_v11 = vld [vmem:[#allocation3] sm:$0xff] }
 0x68a   :  { %463 = vrot.lane.b32.xlu0 %v457_v13, %s1982_s3  ;;  %v461_v17 = vmul.f32 %v459_v16, %v457_v13 }
 0x6fc   :  { %v464_v14 = vpop.permute.xlu0 %463 }
 0x6fd   :  { %v466_v15 = vmul.f32 %v464_v14, %v457_v13 }
 0x6ff   :  { %468 = vrot.lane.b32.xlu1 %v466_v15, %s1983_s25 }
 0x771   :  { %v469_v18 = vpop.permute.xlu1 %468 }
 0x772   :  { %v471_v19 = vadd.f32 %v469_v18, %v461_v17 }
 0x774   :  { %1859 = vtanh.f32 %v471_v19  ;;  %v568_v33 = vrot.slane %v471_v19, 4  ;;  %v2275_v19 = vld [vmem:[%s2383_s6] ss:$0 sm:$0xff]  ;;  %s1984_s6 = smov [#allocation6]  }
 0x775   :  { %s1550_s14 = sshll.u32 %s1984_s6, 4  ;;  %s1551_s14 = int_to_ptr.vmem [resolvable:$true] %s1550_s14 }
 0x776   :  { %s1953_s15 = scalar_lea.vmem %s1551_s14, 64  ;;  %p1958_p6 = scmp.lt.s32.totalorder %s1551_s14, %s1551_s14 }
 0x777   :  { %p1954_p5 = scmp.ne.s32.totalorder %s1551_s14, %s1953_s15  ;;  %p1959_p7 = scmp.lt.s32.totalorder %s1953_s15, %s1953_s15 }
 0x779   :  { %p1960_p8 = por %p1959_p7, %p1958_p6 }
 0x77b   :  { %p1961_p9 = pnand %p1960_p8, %p1954_p5 }
 0x781   :  { %v1860_v20 = vpop.eup %1859 }
 0x782   :  { %474 = vrot.lane.b32.xlu0 %v1860_v20, %s1982_s3 }
 0x7f4   :  { %v475_v21 = vpop.permute.xlu0 %474 }
 0x7f5   :  { %v477_v23 = vmul.f32 %v475_v21, %v457_v13 }
 0x7f7   :  { %479 = vrot.lane.b32.xlu1 %v477_v23, %s1983_s25 }
 0x869   :  { %v480_v24 = vpop.permute.xlu1 %479 }
 0x86a   :  { %482 = vst.msk [vmem:[#allocation2 + $0x8] sm:$0xf] %vm262_vm5, %v480_v24  ;;  %1722 = vmatmul.mubr.msk.f32.vlgmr.msra.gmra.mxu1 %vm69_vm1, %v480_v24 }
 0x86b   :  { %1736 = vmatpush3.msra.mxu1 %v2040_v2  ;;  %1743 = vmatprep.mubr.msk.f32.mxu1 %vm1981_vm0, %v1980_v0 }
 0x86c   :  { %1737 = vmatprep.subr.mxu1 %v1980_v0 }
 0x86d   :  { %1738 = vmatpush3.msra.mxu1 %v2049_v4 }
 0x86e   :  { %1739 = vmatprep.subr.mxu1 %v1980_v0 }
 0x86f   :  { %1740 = vmatpush3.msra.mxu1 %v2059_v6 }
 0x870   :  { %1741 = vmatprep.subr.mxu1 %v1980_v0 }
 0x871   :  { %1742 = vmatpush3.msra.mxu1 %v2070_v8 }
 0x872   :  { %1763 = vmatprep.subr.mxu1 %v1980_v0 }
 0x92a   :  { %v551_v25 = vpop.f32.mrf.mxu1 }
 0x92b   :  { %v556_v26 = vrot.slane %v551_v25, 4 }
 0x92c   :  { %v1723_v2 = vpop.f32.mrf.mxu1 }
 0x92d   :  { %v558_v27 = vadd.f32 %v556_v26, %v151_v62 }
 0x92f   :  { %v1569_v28 = vmul.f32 -1.442695, %v558_v27 }
 0x931   :  { %1861 = vpow2.f32 %v1569_v28 }
 0x932   :  { %1863 = vtanh.f32 %v558_v27 }
 0x93e   :  { %v1862_v29 = vpop.eup %1861 }
 0x93f   :  { %v563_v30 = vadd.f32 1.0, %v1862_v29  ;;  %v1864_v4 = vpop.eup %1863 }
 0x941   :  { %1865 = vrcp.f32 %v563_v30 }
 0x94e   :  { %v1866_v31 = vpop.eup %1865 }
 0x94f   :  { %v566_v6 = vsel %vm2109_vm4, %v1864_v4, %v1866_v31 }
 0x950   :  { %572 = vrot.lane.b32.xlu0 %v566_v6, %s1982_s3  ;;  %v570_v34 = vmul.f32 %v568_v33, %v566_v6 }
 0x9c2   :  { %v573_v8 = vpop.permute.xlu0 %572 }
 0x9c3   :  { %v575_v32 = vmul.f32 %v573_v8, %v566_v6 }
 0x9c5   :  { %577 = vrot.lane.b32.xlu1 %v575_v32, %s1983_s25 }
 0xa37   :  { %v578_v35 = vpop.permute.xlu1 %577 }
 0xa38   :  { %v580_v36 = vadd.f32 %v578_v35, %v570_v34 }
 0xa3a   :  { %1867 = vtanh.f32 %v580_v36  ;;  %v677_v53 = vrot.slane %v580_v36, 4 }
 0xa47   :  { %v1868_v37 = vpop.eup %1867 }
 0xa48   :  { %583 = vrot.lane.b32.xlu0 %v1868_v37, %s1982_s3 }
 0xaba   :  { %v584_v38 = vpop.permute.xlu0 %583 }
 0xabb   :  { %v2189_v39 = vmul.f32 %v584_v38, %v566_v6 }
 0xabd   :  { %v592_v40 = vrot.slane %v2189_v39, 4 }
 0xabf   :  { %593 = vrot.lane.b32.xlu1 %v592_v40, %s1983_s25 }
 0xb31   :  { %v594_v41 = vpop.permute.xlu1 %593 }
 0xb32   :  { %1733 = vmatmul.mubr.msk.f32.vlgmr.msra.gmra.mxu0 %vm69_vm1, %v594_v41 }
 0xb33   :  { %1754 = vmatprep.mubr.msk.f32.mxu0 %vm1981_vm0, %v1980_v0  ;;  %1747 = vmatpush3.msra.mxu0 %v816_v58 }
 0xb34   :  { %1748 = vmatprep.subr.mxu0 %v1980_v0 }
 0xb35   :  { %1749 = vmatpush3.msra.mxu0 %v815_v59 }
 0xb36   :  { %1750 = vmatprep.subr.mxu0 %v1980_v0 }
 0xb37   :  { %1751 = vmatpush3.msra.mxu0 %v814_v60 }
 0xb38   :  { %1752 = vmatprep.subr.mxu0 %v1980_v0 }
 0xb39   :  { %1753 = vmatpush3.msra.mxu0 %v813_v61 }
 0xb3a   :  { %1774 = vmatprep.subr.mxu0 %v1980_v0 }
 0xbf2   :  { %v663_v43 = vpop.f32.mrf.mxu0 }
 0xbf3   :  { %v667_v44 = vadd.f32 %v663_v43, %v2198_v42 }
 0xbf4   :  { %v1734_v45 = vpop.f32.mrf.mxu0 }
 0xbf5   :  { %v1571_v46 = vmul.f32 -1.442695, %v667_v44 }
 0xbf7   :  { %1869 = vpow2.f32 %v1571_v46 }
 0xbf8   :  { %1871 = vtanh.f32 %v667_v44 }
 0xc04   :  { %v1870_v47 = vpop.eup %1869 }
 0xc05   :  { %v672_v48 = vadd.f32 1.0, %v1870_v47  ;;  %v1872_v49 = vpop.eup %1871 }
 0xc07   :  { %1873 = vrcp.f32 %v672_v48 }
 0xc14   :  { %v1874_v50 = vpop.eup %1873 }
 0xc15   :  { %v675_v51 = vsel %vm2109_vm4, %v1872_v49, %v1874_v50 }
 0xc16   :  { %681 = vrot.lane.b32.xlu0 %v675_v51, %s1982_s3  ;;  %v679_v54 = vmul.f32 %v677_v53, %v675_v51 }
 0xc88   :  { %v682_v52 = vpop.permute.xlu0 %681 }
 0xc89   :  { %v684_v10 = vmul.f32 %v682_v52, %v675_v51 }
 0xc8b   :  { %686 = vrot.lane.b32.xlu1 %v684_v10, %s1983_s25 }
 0xcfd   :  { %v687_v56 = vpop.permute.xlu1 %686 }
 0xcfe   :  { %v2205_v57 = vadd.f32 %v687_v56, %v679_v54 }
 0xd00   :  { %1875 = vtanh.f32 %v2205_v57  ;;  %v786_v37 = vrot.slane %v2205_v57, 4 }
 0xd0d   :  { %v1876_v62 = vpop.eup %1875 }
 0xd0e   :  { %692 = vrot.lane.b32.xlu0 %v1876_v62, %s1982_s3 }
 0xd12   :  { %369 = vrot.lane.b32.xlu0 %v2148_v55, %s1983_s25  ;;  %v2239_v55 = vld [vmem:[#allocation3 + $0x8] sm:$0xff] }
 0xd80   :  { %v693_v63 = vpop.permute.xlu0 %692 }
 0xd81   :  { %v695_v1 = vmul.f32 %v693_v63, %v675_v51 }
 0xd83   :  { %697 = vrot.lane.b32.xlu1 %v695_v1, %s1983_s25 }
 0xd84   :  { %v370_v3 = vpop.permute.xlu0 %369 }
 0xd85   :  { %373 = vst.msk [vmem:[#allocation2] sm:$0xf0] %vm372_vm6, %v370_v3 }
 0xd8c   :  { %v810_v5 = vld [vmem:[#allocation2] sm:$0xff] }
 0xd8d   :  { %1755 = vmatmul.mubr.msk.f32.vlgmr.msra.gmra.mxu0 %vm69_vm1, %v810_v5 }
 0xd8e   :  { %1757 = vmatprep.mubr.msk.f32.mxu0 %vm1981_vm0, %v1980_v0  ;;  %1775 = vmatpush3.msra.mxu0 %v2230_v7 }
 0xd8f   :  { %1776 = vmatprep.subr.mxu0 %v1980_v0 }
 0xd90   :  { %1777 = vmatpush3.msra.mxu0 %v2235_v9 }
 0xd91   :  { %1778 = vmatprep.subr.mxu0 %v1980_v0 }
 0xd92   :  { %1779 = vmatpush3.msra.mxu0 %v2239_v55 }
 0xd93   :  { %1780 = vmatprep.subr.mxu0 %v1980_v0 }
 0xd94   :  { %1781 = vmatpush3.msra.mxu0 %v2243_v11 }
 0xd95   :  { %1796 = vmatprep.subr.mxu0 %v1980_v0 }
 0xdf5   :  { %v698_v12 = vpop.permute.xlu1 %697 }
 0xdf6   :  { %700 = vst.msk [vmem:[#allocation2 + $0x10] sm:$0xf] %vm262_vm5, %v698_v12  ;;  %1744 = vmatmul.mubr.msk.f32.vlgmr.msra.gmra.mxu1 %vm69_vm1, %v698_v12 }
 0xdf7   :  { %1764 = vmatpush3.msra.mxu1 %v2230_v7  ;;  %1771 = vmatprep.mubr.msk.f32.mxu1 %vm1981_vm0, %v1980_v0 }
 0xdf8   :  { %1765 = vmatprep.subr.mxu1 %v1980_v0 }
 0xdf9   :  { %1766 = vmatpush3.msra.mxu1 %v2235_v9 }
 0xdfa   :  { %1767 = vmatprep.subr.mxu1 %v1980_v0 }
 0xdfb   :  { %1768 = vmatpush3.msra.mxu1 %v2239_v55 }
 0xdfc   :  { %1769 = vmatprep.subr.mxu1 %v1980_v0 }
 0xdfd   :  { %1770 = vmatpush3.msra.mxu1 %v2243_v11 }
 0xdfe   :  { %1772 = vmatmul.mubr.f32.vlgmr.msra.gmra.mxu1 %v1980_v0  ;;  %1785 = vmatprep.subr.mxu1 %v1980_v0 }
 0xdff   :  { %1786 = vmatpush3.msra.mxu1 %v2230_v7  ;;  %1793 = vmatprep.mubr.msk.f32.mxu1 %vm1981_vm0, %v1980_v0 }
 0xe00   :  { %1787 = vmatprep.subr.mxu1 %v1980_v0 }
 0xe01   :  { %1788 = vmatpush3.msra.mxu1 %v2235_v9 }
 0xe02   :  { %1789 = vmatprep.subr.mxu1 %v1980_v0 }
 0xe03   :  { %1790 = vmatpush3.msra.mxu1 %v2239_v55 }
 0xe04   :  { %1791 = vmatprep.subr.mxu1 %v1980_v0 }
 0xe05   :  { %1792 = vmatpush3.msra.mxu1 %v2243_v11 }
 0xe06   :  { %1807 = vmatprep.subr.mxu1 %v1980_v0 }
 0xe4d   :  { %v898_v13 = vpop.f32.mrf.mxu0 }
 0xe4e   :  { %v2278_v21 = vadd.f32 %v2275_v19, %v898_v13 }
 0xe4f   :  { %v1756_v14 = vpop.f32.mrf.mxu0 }
 0xeb6   :  { %v769_v15 = vpop.f32.mrf.mxu1 }
 0xeb7   :  { %v774_v16 = vrot.slane %v769_v15, 4 }
 0xeb8   :  { %v1745_v17 = vpop.f32.mrf.mxu1 }
 0xeb9   :  { %v776_v18 = vadd.f32 %v774_v16, %v2198_v42 }
 0xebb   :  { %v1573_v20 = vmul.f32 -1.442695, %v776_v18 }
 0xebd   :  { %1877 = vpow2.f32 %v1573_v20 }
 0xebe   :  { %v978_v23 = vpop.f32.mrf.mxu1 }
 0xebf   :  { %v982_v24 = vadd.f32 %v978_v23, %v2278_v21 }
 0xec0   :  { %v1773_v25 = vpop.f32.mrf.mxu1 }
 0xec1   :  { %v1578_v26 = vmul.f32 -1.442695, %v982_v24 }
 0xec3   :  { %1879 = vpow2.f32 %v1578_v26 }
 0xec4   :  { %1881 = vtanh.f32 %v776_v18 }
 0xeca   :  { %v1878_v2 = vpop.eup %1877 }
 0xecb   :  { %v781_v27 = vadd.f32 1.0, %v1878_v2 }
 0xecd   :  { %1883 = vrcp.f32 %v781_v27 }
 0xece   :  { %1885 = vtanh.f32 %v982_v24 }
 0xed0   :  { %v1880_v28 = vpop.eup %1879 }
 0xed1   :  { %v987_v29 = vadd.f32 1.0, %v1880_v28  ;;  %v1882_v30 = vpop.eup %1881 }
 0xed3   :  { %1887 = vrcp.f32 %v987_v29 }
 0xeda   :  { %v1884_v4 = vpop.eup %1883 }
 0xedb   :  { %v784_v31 = vsel %vm2109_vm4, %v1882_v30, %v1884_v4  ;;  %v1886_v6 = vpop.eup %1885 }
 0xedc   :  { %790 = vrot.lane.b32.xlu1 %v784_v31, %s1982_s3  ;;  %v788_v38 = vmul.f32 %v786_v37, %v784_v31 }
 0xee0   :  { %v1888_v8 = vpop.eup %1887 }
 0xee1   :  { %v990_v32 = vsel %vm2109_vm4, %v1886_v6, %v1888_v8 }
 0xee2   :  { %993 = vrot.lane.b32.xlu0 %v990_v32, %s1982_s3  ;;  %v991_v42 = vmul.f32 0.0, %v990_v32 }
 0xf4e   :  { %v791_v33 = vpop.permute.xlu1 %790 }
 0xf4f   :  { %v793_v34 = vmul.f32 %v791_v33, %v784_v31 }
 0xf51   :  { %795 = vrot.lane.b32.xlu1 %v793_v34, %s1983_s25 }
 0xf54   :  { %v994_v35 = vpop.permute.xlu0 %993 }
 0xf55   :  { %v996_v36 = vmul.f32 %v994_v35, %v990_v32 }
 0xf57   :  { %998 = vrot.lane.b32.xlu0 %v996_v36, %s1983_s25 }
 0xfc3   :  { %v796_v40 = vpop.permute.xlu1 %795 }
 0xfc4   :  { %v798_v41 = vadd.f32 %v796_v40, %v788_v38 }
 0xfc6   :  { %1889 = vtanh.f32 %v798_v41 }
 0xfc9   :  { %v999_v43 = vpop.permute.xlu0 %998 }
 0xfca   :  { %v1001_v44 = vadd.f32 %v999_v43, %v991_v42 }
 0xfcc   :  { %1891 = vtanh.f32 %v1001_v44  ;;  %v1096_v16 = vrot.slane %v1001_v44, 4 }
 0xfd3   :  { %v1890_v45 = vpop.eup %1889 }
 0xfd4   :  { %801 = vrot.lane.b32.xlu1 %v1890_v45, %s1982_s3 }
 0xfd8   :  { %588 = vrot.lane.b32.xlu1 %v2189_v39, %s1983_s25 }
 0xfd9   :  { %v1892_v46 = vpop.eup %1891 }
 0xfda   :  { %1004 = vrot.lane.b32.xlu0 %v1892_v46, %s1982_s3 }
0x1046   :  { %v802_v47 = vpop.permute.xlu1 %801 }
0x1047   :  { %v804_v48 = vmul.f32 %v802_v47, %v784_v31 }
0x1049   :  { %806 = vrot.lane.b32.xlu0 %v804_v48, %s1983_s25 }
0x104a   :  { %v589_v49 = vpop.permute.xlu1 %588 }
0x104b   :  { %591 = vst.msk [vmem:[#allocation2 + $0x8] sm:$0xf0] %vm372_vm6, %v589_v49 }
0x104c   :  { %v1005_v50 = vpop.permute.xlu0 %1004 }
0x104d   :  { %v1007_v51 = vmul.f32 %v1005_v50, %v990_v32 }
0x104f   :  { %1009 = vrot.lane.b32.xlu1 %v1007_v51, %s1983_s25 }
0x1052   :  { %v811_v52 = vld [vmem:[#allocation2 + $0x8] sm:$0xff] }
0x1053   :  { %1758 = vmatmul.mubr.msk.f32.gmra.mxu0 %vm69_vm1, %v811_v52 }
0x1054   :  { %1760 = vmatprep.mubr.msk.f32.mxu0 %vm1981_vm0, %v1980_v0 }
0x10bb   :  { %v807_v39 = vpop.permute.xlu0 %806 }
0x10bc   :  { %809 = vst.msk [vmem:[#allocation2 + $0x10] sm:$0xf0] %vm372_vm6, %v807_v39 }
0x10c1   :  { %v1010_v53 = vpop.permute.xlu1 %1009 }
0x10c3   :  { %v812_v10 = vld [vmem:[#allocation2 + $0x10] sm:$0xff] }
0x10c4   :  { %1761 = vmatmul.mubr.msk.f32.gmra.mxu0 %vm69_vm1, %v812_v10 }
0x10c5   :  { %1782 = vmatprep.mubr.msk.f32.mxu0 %vm1981_vm0, %v1980_v0 }
0x10c8   :  { %1783 = vmatmul.mubr.msk.f32.vlgmr.msra.gmra.mxu0 %vm69_vm1, %v1010_v53 }
0x10c9   :  { %1797 = vmatpush3.msra.mxu0 %v2230_v7  ;;  %1804 = vmatprep.mubr.msk.f32.mxu0 %vm1981_vm0, %v1980_v0 }
0x10ca   :  { %1798 = vmatprep.subr.mxu0 %v1980_v0 }
0x10cb   :  { %1799 = vmatpush3.msra.mxu0 %v2235_v9 }
0x10cc   :  { %1800 = vmatprep.subr.mxu0 %v1980_v0 }
0x10cd   :  { %1801 = vmatpush3.msra.mxu0 %v2239_v55 }
0x10ce   :  { %1802 = vmatprep.subr.mxu0 %v1980_v0 }
0x10cf   :  { %1803 = vmatpush3.msra.mxu0 %v2243_v11 }
0x10d0   :  { %1818 = vmatprep.subr.mxu0 %v1980_v0 }
0x1113   :  { %v903_v54 = vpop.f32.mrf.mxu0 }
0x1114   :  { %v904_v2 = vadd.f32 %v2275_v19, %v903_v54 }
0x1115   :  { %v1759_v56 = vpop.f32.mrf.mxu0 }
0x1184   :  { %v2315_v57 = vpop.f32.mrf.mxu0 }
0x1186   :  { %v1762_v58 = vpop.f32.mrf.mxu0 }
0x1188   :  { %v1079_v59 = vpop.f32.mrf.mxu0 }
0x1189   :  { %v1084_v60 = vrot.slane %v1079_v59, 4 }
0x118a   :  { %v1784_v61 = vpop.f32.mrf.mxu0 }
0x118b   :  { %v1086_v62 = vadd.f32 %v1084_v60, %v2278_v21  ;;  %v909_v60 = vadd.f32 %v2275_v19, %v2315_v57 }
0x118d   :  { %v1580_v63 = vmul.f32 -1.442695, %v1086_v62 }
0x118f   :  { %1893 = vpow2.f32 %v1580_v63 }
0x1190   :  { %1895 = vtanh.f32 %v1086_v62 }
0x119c   :  { %v1894_v1 = vpop.eup %1893 }
0x119d   :  { %v1091_v3 = vadd.f32 1.0, %v1894_v1  ;;  %v1896_v5 = vpop.eup %1895 }
0x119f   :  { %1897 = vrcp.f32 %v1091_v3 }
0x11ac   :  { %v1898_v12 = vpop.eup %1897 }
0x11ad   :  { %v1094_v13 = vsel %vm2109_vm4, %v1896_v5, %v1898_v12 }
0x11ae   :  { %1100 = vrot.lane.b32.xlu0 %v1094_v13, %s1982_s3  ;;  %v1098_v17 = vmul.f32 %v1096_v16, %v1094_v13 }
0x1220   :  { %v1101_v14 = vpop.permute.xlu0 %1100 }
0x1221   :  { %v1103_v15 = vmul.f32 %v1101_v14, %v1094_v13 }
0x1223   :  { %1105 = vrot.lane.b32.xlu1 %v1103_v15, %s1983_s25 }
0x1295   :  { %v1106_v18 = vpop.permute.xlu1 %1105 }
0x1296   :  { %v1108_v20 = vadd.f32 %v1106_v18, %v1098_v17 }
0x1298   :  { %1899 = vtanh.f32 %v1108_v20  ;;  %v1201_v35 = vrot.slane %v1108_v20, 4 }
0x12a5   :  { %v1900_v21 = vpop.eup %1899 }
0x12a6   :  { %1111 = vrot.lane.b32.xlu0 %v1900_v21, %s1982_s3 }
0x1318   :  { %v1112_v23 = vpop.permute.xlu0 %1111 }
0x1319   :  { %v1114_v24 = vmul.f32 %v1112_v23, %v1094_v13 }
0x131b   :  { %v1116_v25 = vrot.slane %v1114_v24, 4 }
0x131d   :  { %1117 = vrot.lane.b32.xlu1 %v1116_v25, %s1983_s25 }
0x138f   :  { %v1118_v26 = vpop.permute.xlu1 %1117 }
0x1390   :  { %1794 = vmatmul.mubr.msk.f32.vlgmr.msra.gmra.mxu1 %vm69_vm1, %v1118_v26 }
0x1391   :  { %1808 = vmatpush3.msra.mxu1 %v2230_v7  ;;  %1815 = vmatprep.mubr.msk.f32.mxu1 %vm1981_vm0, %v1980_v0 }
0x1392   :  { %1809 = vmatprep.subr.mxu1 %v1980_v0 }
0x1393   :  { %1810 = vmatpush3.msra.mxu1 %v2235_v9 }
0x1394   :  { %1811 = vmatprep.subr.mxu1 %v1980_v0 }
0x1395   :  { %1812 = vmatpush3.msra.mxu1 %v2239_v55 }
0x1396   :  { %1813 = vmatprep.subr.mxu1 %v1980_v0 }
0x1397   :  { %1814 = vmatpush3.msra.mxu1 %v2243_v11 }
0x1450   :  { %v1187_v27 = vpop.f32.mrf.mxu1 }
0x1451   :  { %v1191_v28 = vadd.f32 %v1187_v27, %v904_v2 }
0x1452   :  { %v1795_v29 = vpop.f32.mrf.mxu1 }
0x1453   :  { %v1582_v30 = vmul.f32 -1.442695, %v1191_v28 }
0x1455   :  { %1901 = vpow2.f32 %v1582_v30 }
0x1456   :  { %1903 = vtanh.f32 %v1191_v28 }
0x1462   :  { %v1902_v4 = vpop.eup %1901 }
0x1463   :  { %v1196_v31 = vadd.f32 1.0, %v1902_v4  ;;  %v1904_v6 = vpop.eup %1903 }
0x1465   :  { %1905 = vrcp.f32 %v1196_v31 }
0x1472   :  { %v1906_v8 = vpop.eup %1905 }
0x1473   :  { %v1199_v32 = vsel %vm2109_vm4, %v1904_v6, %v1906_v8 }
0x1474   :  { %1205 = vrot.lane.b32.xlu0 %v1199_v32, %s1982_s3  ;;  %v1203_v36 = vmul.f32 %v1201_v35, %v1199_v32 }
0x14e6   :  { %v1206_v33 = vpop.permute.xlu0 %1205 }
0x14e7   :  { %v1208_v34 = vmul.f32 %v1206_v33, %v1199_v32 }
0x14e9   :  { %1210 = vrot.lane.b32.xlu1 %v1208_v34, %s1983_s25 }
0x155b   :  { %v1211_v37 = vpop.permute.xlu1 %1210 }
0x155c   :  { %v1213_v38 = vadd.f32 %v1211_v37, %v1203_v36 }
0x155e   :  { %1907 = vtanh.f32 %v1213_v38 }
0x156b   :  { %v1908_v40 = vpop.eup %1907 }
0x156c   :  { %1216 = vrot.lane.b32.xlu0 %v1908_v40, %s1982_s3 }
0x15de   :  { %v1217_v41 = vpop.permute.xlu0 %1216 }
0x15df   :  { %v1219_v42 = vmul.f32 %v1217_v41, %v1199_v32 }
0x15e1   :  { %1221 = vrot.lane.b32.xlu1 %v1219_v42, %s1983_s25 }
0x1653   :  { %v1222_v43 = vpop.permute.xlu1 %1221 }
0x1654   :  { %1805 = vmatmul.mubr.msk.f32.vlgmr.msra.gmra.mxu0 %vm69_vm1, %v1222_v43 }
0x1655   :  { %1819 = vmatpush3.msra.mxu0 %v2230_v7  ;;  %1826 = vmatprep.mubr.msk.f32.mxu0 %vm1981_vm0, %v1980_v0 }
0x1656   :  { %1820 = vmatprep.subr.mxu0 %v1980_v0 }
0x1657   :  { %1821 = vmatpush3.msra.mxu0 %v2235_v9 }
0x1658   :  { %1822 = vmatprep.subr.mxu0 %v1980_v0 }
0x1659   :  { %1823 = vmatpush3.msra.mxu0 %v2239_v55 }
0x165a   :  { %1824 = vmatprep.subr.mxu0 %v1980_v0 }
0x165b   :  { %1825 = vmatpush3.msra.mxu0 %v2243_v11  ;;  %v1308_v11 = vrot.slane %v1213_v38, 4 }
0x1714   :  { %v1291_v44 = vpop.f32.mrf.mxu0 }
0x1715   :  { %v1296_v45 = vrot.slane %v1291_v44, 4 }
0x1716   :  { %v1806_v46 = vpop.f32.mrf.mxu0 }
0x1717   :  { %v1298_v47 = vadd.f32 %v1296_v45, %v904_v2 }
0x1719   :  { %v1584_v7 = vmul.f32 -1.442695, %v1298_v47 }
0x171b   :  { %1909 = vpow2.f32 %v1584_v7 }
0x171c   :  { %1911 = vtanh.f32 %v1298_v47 }
0x1728   :  { %v1910_v48 = vpop.eup %1909 }
0x1729   :  { %v1303_v49 = vadd.f32 1.0, %v1910_v48  ;;  %v1912_v50 = vpop.eup %1911 }
0x172b   :  { %1913 = vrcp.f32 %v1303_v49 }
0x1738   :  { %v1914_v9 = vpop.eup %1913 }
0x1739   :  { %v1306_v51 = vsel %vm2109_vm4, %v1912_v50, %v1914_v9 }
0x173a   :  { %1312 = vrot.lane.b32.xlu0 %v1306_v51, %s1982_s3  ;;  %v1310_v52 = vmul.f32 %v1308_v11, %v1306_v51 }
0x17ac   :  { %v1313_v0 = vpop.permute.xlu0 %1312 }
0x17ad   :  { %v1315_v55 = vmul.f32 %v1313_v0, %v1306_v51 }
0x17af   :  { %1317 = vrot.lane.b32.xlu1 %v1315_v55, %s1983_s25 }
0x1821   :  { %v1318_v39 = vpop.permute.xlu1 %1317 }
0x1822   :  { %v1320_v10 = vadd.f32 %v1318_v39, %v1310_v52 }
0x1824   :  { %1915 = vtanh.f32 %v1320_v10  ;;  %v1413_v19 = vrot.slane %v1320_v10, 4 }
0x1831   :  { %v1916_v53 = vpop.eup %1915 }
0x1832   :  { %1323 = vrot.lane.b32.xlu0 %v1916_v53, %s1982_s3 }
0x18a4   :  { %v1324_v54 = vpop.permute.xlu0 %1323 }
0x18a5   :  { %v1326_v56 = vmul.f32 %v1324_v54, %v1306_v51 }
0x18a7   :  { %v1328_v58 = vrot.slane %v1326_v56, 4 }
0x18a9   :  { %1329 = vrot.lane.b32.xlu1 %v1328_v58, %s1983_s25 }
0x191b   :  { %v1330_v59 = vpop.permute.xlu1 %1329 }
0x191c   :  { %1816 = vmatmul.mubr.msk.f32.vlgmr.msra.gmra.mxu1 %vm69_vm1, %v1330_v59 }
0x19dc   :  { %v1399_v61 = vpop.f32.mrf.mxu1 }
0x19dd   :  { %v1403_v62 = vadd.f32 %v1399_v61, %v909_v60 }
0x19de   :  { %v1817_v63 = vpop.f32.mrf.mxu1 }
0x19df   :  { %v1586_v1 = vmul.f32 -1.442695, %v1403_v62 }
0x19e1   :  { %1917 = vpow2.f32 %v1586_v1 }
0x19e2   :  { %1919 = vtanh.f32 %v1403_v62 }
0x19ee   :  { %v1918_v3 = vpop.eup %1917 }
0x19ef   :  { %v1408_v5 = vadd.f32 1.0, %v1918_v3  ;;  %v1920_v12 = vpop.eup %1919 }
0x19f1   :  { %1921 = vrcp.f32 %v1408_v5 }
0x19fe   :  { %v1922_v13 = vpop.eup %1921 }
0x19ff   :  { %v1411_v14 = vsel %vm2109_vm4, %v1920_v12, %v1922_v13 }
0x1a00   :  { %1417 = vrot.lane.b32.xlu0 %v1411_v14, %s1982_s3  ;;  %v1415_v57 = vmul.f32 %v1413_v19, %v1411_v14 }
0x1a72   :  { %v1418_v15 = vpop.permute.xlu0 %1417 }
0x1a73   :  { %v1420_v16 = vmul.f32 %v1418_v15, %v1411_v14 }
0x1a75   :  { %1422 = vrot.lane.b32.xlu1 %v1420_v16, %s1983_s25 }
0x1ae7   :  { %v1423_v17 = vpop.permute.xlu1 %1422 }
0x1ae8   :  { %v1425_v18 = vadd.f32 %v1423_v17, %v1415_v57 }
0x1aea   :  { %1923 = vtanh.f32 %v1425_v18  ;;  %v1520_v33 = vrot.slane %v1425_v18, 4 }
0x1af7   :  { %v1924_v20 = vpop.eup %1923 }
0x1af8   :  { %1428 = vrot.lane.b32.xlu0 %v1924_v20, %s1982_s3 }
0x1b6a   :  { %v1429_v21 = vpop.permute.xlu0 %1428 }
0x1b6b   :  { %v1431_v23 = vmul.f32 %v1429_v21, %v1411_v14 }
0x1b6d   :  { %1433 = vrot.lane.b32.xlu1 %v1431_v23, %s1983_s25 }
0x1bdf   :  { %v1434_v24 = vpop.permute.xlu1 %1433 }
0x1be0   :  { %1827 = vmatmul.mubr.msk.f32.vlgmr.msra.gmra.mxu0 %vm69_vm1, %v1434_v24 }
0x1ca0   :  { %v1503_v25 = vpop.f32.mrf.mxu0 }
0x1ca1   :  { %v1508_v26 = vrot.slane %v1503_v25, 4 }
0x1ca2   :  { %v1828_v2 = vpop.f32.mrf.mxu0 }
0x1ca3   :  { %v1510_v27 = vadd.f32 %v1508_v26, %v909_v60 }
0x1ca5   :  { %v1588_v28 = vmul.f32 -1.442695, %v1510_v27 }
0x1ca7   :  { %1925 = vpow2.f32 %v1588_v28 }
0x1ca8   :  { %1927 = vtanh.f32 %v1510_v27 }
0x1cb4   :  { %v1926_v29 = vpop.eup %1925 }
0x1cb5   :  { %v1515_v30 = vadd.f32 1.0, %v1926_v29  ;;  %v1928_v4 = vpop.eup %1927 }
0x1cb7   :  { %1929 = vrcp.f32 %v1515_v30 }
0x1cc4   :  { %v1930_v31 = vpop.eup %1929 }
0x1cc5   :  { %v1518_v6 = vsel %vm2109_vm4, %v1928_v4, %v1930_v31 }
0x1cc6   :  { %1524 = vrot.lane.b32.xlu0 %v1518_v6, %s1982_s3  ;;  %v1522_v34 = vmul.f32 %v1520_v33, %v1518_v6 }
0x1d38   :  { %v1525_v8 = vpop.permute.xlu0 %1524 }
0x1d39   :  { %v1527_v32 = vmul.f32 %v1525_v8, %v1518_v6 }
0x1d3b   :  { %1529 = vrot.lane.b32.xlu1 %v1527_v32, %s1983_s25 }
0x1dad   :  { %v1530_v35 = vpop.permute.xlu1 %1529 }
0x1dae   :  { %v1532_v36 = vadd.f32 %v1530_v35, %v1522_v34 }
0x1db0   :  { %1931 = vtanh.f32 %v1532_v36 }
0x1dbd   :  { %v1932_v37 = vpop.eup %1931 }
0x1dbe   :  { %1535 = vrot.lane.b32.xlu0 %v1932_v37, %s1982_s3 }
0x1e30   :  { %v1536_v38 = vpop.permute.xlu0 %1535 }
0x1e31   :  { %v1538_v40 = vmul.f32 %v1536_v38, %v1518_v6 }
0x1e33   :  { %1540 = vrot.lane.b32.xlu1 %v1538_v40, %s1983_s25 }
0x1ea5   :  { %v1541_v22 = vpop.permute.xlu1 %1540 }
0x1ea6   :  { %1543 = vst.msk [vmem:[#allocation6 - $0x4] sm:$0xf0] %vm372_vm6, %v1541_v22 }
0x1ea7   :  { %1964 = shalt.err (!%p1961_p9)
}
0x1ea8   :  { %1553 = dma.vmem_to_hbm [thread:$0]  %s1551_s14, 64, %s2384_s7, [#allocation5]  }
0x1ea9   :  { %1975 = dma.done.wait [#allocation5], 64  }
0x1eaa   :  { %1976 = vsyncadd [#allocation5], 4294967232 }
0x1eab   :  { %1557 = vsyncpa [#allocation4], 1 }
0x1eac   :  { %1558 = vsyncpa [#allocation5], 1 }

</bundles_post_ra>
